<compile_context>
chip_gen: v7x
topology: tpu7x:2x2x1
jax: 0.10.0
libtpu: 0.0.40
codegen_flags: <defaults>
</compile_context>

<pallas_src>
import functools

import jax
import jax.numpy as jnp
from jax.experimental import pallas as pl
from jax.experimental.pallas import tpu as pltpu


def _scatter_mean_kernel(vid_ref, feat_ref, out_ref, *, chunk):
    """One grid step: scatter one point tile into one voxel block.

    Grid is (voxel block j [parallel], point tile t [arbitrary / reduction]).

    vid_ref  : (TN, 1)   int32  voxel id per point (-1 => dropped / padded point)
    feat_ref : (C+1, TN) f32    lane-dense point features; last row is all ones
                                so the per-voxel count falls out of the matmul.
    out_ref  : (C+1, TM) f32    resident accumulator for voxel block j;
                                rows 0..C-1 hold sums (means after finalize).
    """
    j = pl.program_id(0)
    t = pl.program_id(1)

    @pl.when(t == 0)
    def _init():
        out_ref[...] = jnp.zeros_like(out_ref)

    c1 = out_ref.shape[0]          # C + 1
    tm = out_ref.shape[1]
    tn = vid_ref.shape[0]
    n_chunks = tn // chunk

    # Lane iota is identical for every chunk: build it once per grid step.
    lane_iota = jax.lax.broadcasted_iota(jnp.int32, (chunk, tm), 1)   # (chunk, TM)
    base = j * tm                                                     # scalar

    def body(i, acc):
        start = pl.multiple_of(i * chunk, chunk)
        # (chunk, 1) ids, shifted into this voxel block's local [0, TM) range.
        # vid == -1 (dropped/padded) and ids of other blocks fall outside the
        # iota range, so they match no lane and contribute nothing.
        v = vid_ref[pl.ds(start, chunk), :] - base                    # (chunk, 1)
        onehot = (lane_iota == v).astype(jnp.float32)                 # (chunk, TM)
        f = feat_ref[:, pl.ds(start, chunk)]                          # (C+1, chunk)
        # (C+1, chunk) @ (chunk, TM): feature sums + count in one MXU pass.
        return acc + jnp.dot(f, onehot, preferred_element_type=jnp.float32)

    acc = jax.lax.fori_loop(0, n_chunks, body,
                            jnp.zeros((c1, tm), jnp.float32), unroll=True)
    out_ref[...] += acc

    @pl.when(t == pl.num_programs(1) - 1)
    def _finalize():
        total = out_ref[...]                                          # (C+1, TM)
        c = c1 - 1
        cnt = jnp.maximum(total[c:c + 1, :], 1.0)                     # (1, TM)
        # Divide the whole block (the count row becomes an occupancy flag the
        # wrapper discards). f32 counts are exact up to 2^24 points per voxel.
        out_ref[...] = total / cnt


def scatter_mean_pallas(features, vid, m_max, *, tn=2048, tm=1024, tc=256):
    """Per-voxel mean of point features.

    features: (N, C) float32 point features.
    vid     : (N,)   int32 voxel id per point in [0, m_max) or -1 (dropped).
    tn      : point tile (DMA block) size.
    tm      : voxel tile (lane) size; pick so m_pad//tm is >= 2 / even on v7x.
    tc      : in-kernel point sub-chunk (bounds the (tc, tm) one-hot VMEM use).
    Returns : (m_max, C) float32 per-voxel means (empty voxels -> 0).
    """
    n, c = features.shape

    tc = min(tc, tn)
    assert tm % 128 == 0, "voxel tile must be a multiple of 128 (lanes)"
    assert tc % 128 == 0, "point sub-chunk must be a multiple of 128 (lanes)"
    assert tn % tc == 0, "point tile must be a multiple of the sub-chunk"

    # Build the lane-dense feature slab directly in (C+1, N) layout: features^T
    # with an appended all-ones row so the count comes out of the same matmul.
    feat_t = jnp.concatenate(
        [features.astype(jnp.float32).T, jnp.ones((1, n), jnp.float32)], axis=0)

    # Pad the point axis so it tiles evenly; padded points get vid = -1.
    n_pad = ((n + tn - 1) // tn) * tn
    if n_pad != n:
        feat_t = jnp.pad(feat_t, ((0, 0), (0, n_pad - n)))
        vid = jnp.pad(vid, (0, n_pad - n), constant_values=-1)

    # Pad the voxel axis so it tiles evenly (extra columns never match any vid).
    m_pad = ((m_max + tm - 1) // tm) * tm

    kernel = functools.partial(_scatter_mean_kernel, chunk=tc)

    out = pl.pallas_call(
        kernel,
        out_shape=jax.ShapeDtypeStruct((c + 1, m_pad), jnp.float32),
        grid_spec=pltpu.PrefetchScalarGridSpec(
            num_scalar_prefetch=0,
            grid=(m_pad // tm, n_pad // tn),   # (voxel blocks, point tiles)
            in_specs=[
                pl.BlockSpec((tn, 1), lambda j, t: (t, 0)),       # voxel ids
                pl.BlockSpec((c + 1, tn), lambda j, t: (0, t)),   # features^T
            ],
            out_specs=pl.BlockSpec((c + 1, tm), lambda j, t: (0, j)),
        ),
        compiler_params=pltpu.CompilerParams(
            # voxel blocks are independent (shardable across v7x's 2 cores);
            # the point axis is the accumulation axis.
            dimension_semantics=("parallel", "arbitrary"),
            # Blocks plus the chunked one-hot stay well under this on every
            # generation (v5e/v6e: 128 MiB physical, v7x: 64 MiB).
            vmem_limit_bytes=32 * 1024 * 1024,
        ),
    )(vid.reshape(n_pad, 1).astype(jnp.int32), feat_t)

    # Rows 0..C-1 are means, row C is the (discarded) occupancy flag.
    return out[:c, :m_max].T


class DynamicSimpleVFE:
    """JAX/Pallas port of mmdet3d DynamicSimpleVFE (DynamicScatter with mean)."""

    def __init__(self,
                 voxel_size=(0.2, 0.2, 4),
                 point_cloud_range=(0, -40, -3, 70.4, 40, 1)):
        vx, vy, vz = voxel_size
        x0, y0, z0, x1, y1, z1 = point_cloud_range
        self.dx = int(round((x1 - x0) / vx))   # 352
        self.dy = int(round((y1 - y0) / vy))   # 400
        self.dz = int(round((z1 - z0) / vz))   # 1

    def __call__(self, features, coors, m_max, *, tn=2048, tm=1024, tc=256):
        """features: (N, C) float32; coors: (N, 4) int32 (batch_idx, z, y, x)."""
        features = features.astype(jnp.float32)   # force_fp32 behaviour
        coors = coors.astype(jnp.int32)

        # --- glue: linearize voxel coordinates & find unique voxels ---------
        valid = jnp.all(coors >= 0, axis=1)
        b, z, y, x = coors[:, 0], coors[:, 1], coors[:, 2], coors[:, 3]
        key = ((b * self.dz + z) * self.dy + y) * self.dx + x
        sentinel = jnp.iinfo(jnp.int32).max
        key = jnp.where(valid, key, sentinel)

        uniq, inv = jnp.unique(key, size=m_max, fill_value=sentinel,
                               return_inverse=True)
        inv = inv.reshape(key.shape)
        vid = jnp.where(valid, inv.astype(jnp.int32), -1)          # (N,)

        # Overflow guard without a second O(N log N) sort: if the number of
        # distinct keys exceeds m_max, jnp.unique(size=m_max) truncates and
        # some key is no longer representable in `uniq`.
        overflow = jnp.any(uniq[jnp.clip(inv, 0, m_max - 1)] != key)

        # Decode unique keys back to (batch, z, y, x); padding rows -> -1.
        is_pad = uniq == sentinel
        bb = uniq // (self.dz * self.dy * self.dx)
        r = uniq % (self.dz * self.dy * self.dx)
        zz = r // (self.dy * self.dx)
        r2 = r % (self.dy * self.dx)
        yy = r2 // self.dx
        xx = r2 % self.dx
        voxel_coors = jnp.stack([bb, zz, yy, xx], axis=1).astype(jnp.int32)
        voxel_coors = jnp.where(is_pad[:, None], -1, voxel_coors)
        num_voxels = jnp.sum(~is_pad)

        # --- hot path: scatter-mean reduction in the Pallas kernel ----------
        voxel_mean = scatter_mean_pallas(features, vid, m_max,
                                         tn=tn, tm=tm, tc=tc)

        return voxel_mean, voxel_coors, num_voxels, overflow


if __name__ == "__main__":
    key = jax.random.PRNGKey(0)
    k1, k2, k3, k4 = jax.random.split(key, 4)

    N, C = 512, 4          # N points, 4 point features (x, y, z, intensity)
    M_MAX = 512            # static upper bound on number of voxels

    features = jax.random.normal(k1, (N, C), dtype=jnp.float32)
    batch_idx = jax.random.randint(k2, (N,), 0, 2)          # batch = 2
    zc = jnp.zeros((N,), jnp.int32)                          # Dz = 1
    yc = jax.random.randint(k3, (N,), 0, 16)
    xc = jax.random.randint(k4, (N,), 0, 16)
    coors = jnp.stack([batch_idx, zc, yc, xc], axis=1).astype(jnp.int32)
    # Mark a few points as out-of-range (DynamicScatter drops them).
    coors = coors.at[:5].set(-1)

    vfe = DynamicSimpleVFE()
    # Small tiles here so the test exercises every structural path:
    # grid = (4 voxel blocks, 2 point tiles) with 2 in-kernel chunks per tile.
    voxel_mean, voxel_coors, num_voxels, overflow = vfe(
        features, coors, M_MAX, tn=256, tm=128, tc=128)
    jax.block_until_ready((voxel_mean, voxel_coors, num_voxels, overflow))

    # --- plain-JAX reference check --------------------------------------
    valid = jnp.all(coors >= 0, axis=1)
    b, z, y, x = coors[:, 0], coors[:, 1], coors[:, 2], coors[:, 3]
    key_lin = ((b * vfe.dz + z) * vfe.dy + y) * vfe.dx + x
    sentinel = jnp.iinfo(jnp.int32).max
    key_lin = jnp.where(valid, key_lin, sentinel)
    uniq, inv = jnp.unique(key_lin, size=M_MAX, fill_value=sentinel,
                           return_inverse=True)
    vid_ref = jnp.where(valid, inv.astype(jnp.int32).reshape(-1), -1)
    ref_sum = jax.ops.segment_sum(features, vid_ref, num_segments=M_MAX)
    ref_cnt = jax.ops.segment_sum(jnp.ones((N,), jnp.float32), vid_ref,
                                  num_segments=M_MAX)
    ref_mean = ref_sum / jnp.maximum(ref_cnt[:, None], 1.0)

    assert not bool(overflow), "voxel capacity m_max exceeded"
    assert jnp.allclose(voxel_mean, ref_mean, atol=1e-5, rtol=1e-5), \
        "Pallas scatter-mean mismatch vs JAX reference"
    assert int(num_voxels) > 0

    print("KERNEL_OK")
</pallas_src>

<mosaic_0001>
module attributes {stable_mosaic.version = 11 : i64} {
  func.func @_scatter_mean_kernel(%arg0: i32, %arg1: i32, %arg2: memref<256x1xi32, #tpu.memory_space<vmem>>, %arg3: memref<5x256xf32, #tpu.memory_space<vmem>>, %arg4: memref<5x128xf32, #tpu.memory_space<vmem>>) attributes {dimension_semantics = [#tpu.dimension_semantics<parallel>, #tpu.dimension_semantics<arbitrary>], iteration_bounds = array<i64: 4, 2>, scalar_prefetch = 0 : i64, scratch_operands = 0 : i64, tpu.core_type = #tpu.core_type<tc>, window_params = [{transform_indices = @transform_0, window_bounds = array<i64: 256, 1>}, {transform_indices = @transform_1, window_bounds = array<i64: 5, 256>}, {transform_indices = @transform_2, window_bounds = array<i64: 5, 128>}]} {
    %c0_i32 = arith.constant 0 : i32
    %0 = arith.cmpi eq, %arg1, %c0_i32 : i32
    %1 = arith.extui %0 : i1 to i32
    %c0_i32_0 = arith.constant 0 : i32
    %2 = arith.cmpi ne, %1, %c0_i32_0 : i32
    scf.if %2 {
      %cst_15 = arith.constant 0.000000e+00 : f32
      %40 = vector.broadcast %cst_15 : f32 to vector<5x128xf32>
      %c0_16 = arith.constant 0 : index
      %c0_17 = arith.constant 0 : index
      %41 = vector.load %arg4[%c0_16, %c0_17] : memref<5x128xf32, #tpu.memory_space<vmem>>, vector<5x128xf32>
      tpu.vector_store %arg4[%c0_16, %c0_17], %40 {strides = array<i32>} : memref<5x128xf32, #tpu.memory_space<vmem>>, vector<5x128xf32>,
    } else {
    }
    %3 = tpu.iota {dimensions = array<i32: 1>} : vector<128x128xi32>
    %c128_i32 = arith.constant 128 : i32
    %4 = arith.muli %arg0, %c128_i32 : i32
    %cst = arith.constant 0.000000e+00 : f32
    %5 = vector.broadcast %cst : f32 to vector<5x128xf32>
    %c0_i32_1 = arith.constant 0 : i32
    %c128_i32_2 = arith.constant 128 : i32
    %6 = arith.muli %c0_i32_1, %c128_i32_2 : i32
    %7 = tpu.assume_multiple %6, 128 : i32
    %8 = arith.index_cast %7 : i32 to index
    %c0 = arith.constant 0 : index
    %9 = vector.load %arg2[%8, %c0] : memref<256x1xi32, #tpu.memory_space<vmem>>, vector<128x1xi32>
    %10 = vector.broadcast %4 : i32 to vector<128x1xi32>
    %11 = arith.subi %9, %10 : vector<128x1xi32>
    %12 = vector.broadcast %11 : vector<128x1xi32> to vector<128x128xi32>
    %13 = arith.cmpi eq, %3, %12 : vector<128x128xi32>
    %14 = arith.extui %13 : vector<128x128xi1> to vector<128x128xi32>
    %15 = arith.sitofp %14 : vector<128x128xi32> to vector<128x128xf32>
    %c0_3 = arith.constant 0 : index
    %16 = arith.index_cast %7 : i32 to index
    %17 = vector.load %arg3[%c0_3, %16] : memref<5x256xf32, #tpu.memory_space<vmem>>, vector<5x128xf32>
    %cst_4 = arith.constant dense<0.000000e+00> : vector<5x128xf32>
    %18 = tpu.matmul %17, %15, %cst_4 {dimension_numbers = #tpu.dot_dimension_numbers<[1], [0], [0], [1], [0, 0, 1, 1], [], []>} : vector<5x128xf32>, vector<128x128xf32>, vector<5x128xf32> -> vector<5x128xf32>
    %19 = arith.addf %5, %18 : vector<5x128xf32>
    %c1_i32 = arith.constant 1 : i32
    %c128_i32_5 = arith.constant 128 : i32
    %20 = arith.muli %c1_i32, %c128_i32_5 : i32
    %21 = tpu.assume_multiple %20, 128 : i32
    %22 = arith.index_cast %21 : i32 to index
    %c0_6 = arith.constant 0 : index
    %23 = vector.load %arg2[%22, %c0_6] : memref<256x1xi32, #tpu.memory_space<vmem>>, vector<128x1xi32>
    %24 = vector.broadcast %4 : i32 to vector<128x1xi32>
    %25 = arith.subi %23, %24 : vector<128x1xi32>
    %26 = vector.broadcast %25 : vector<128x1xi32> to vector<128x128xi32>
    %27 = arith.cmpi eq, %3, %26 : vector<128x128xi32>
    %28 = arith.extui %27 : vector<128x128xi1> to vector<128x128xi32>
    %29 = arith.sitofp %28 : vector<128x128xi32> to vector<128x128xf32>
    %c0_7 = arith.constant 0 : index
    %30 = arith.index_cast %21 : i32 to index
    %31 = vector.load %arg3[%c0_7, %30] : memref<5x256xf32, #tpu.memory_space<vmem>>, vector<5x128xf32>
    %cst_8 = arith.constant dense<0.000000e+00> : vector<5x128xf32>
    %32 = tpu.matmul %31, %29, %cst_8 {dimension_numbers = #tpu.dot_dimension_numbers<[1], [0], [0], [1], [0, 0, 1, 1], [], []>} : vector<5x128xf32>, vector<128x128xf32>, vector<5x128xf32> -> vector<5x128xf32>
    %33 = arith.addf %19, %32 : vector<5x128xf32>
    %c2_i32 = arith.constant 2 : i32
    %c0_9 = arith.constant 0 : index
    %c0_10 = arith.constant 0 : index
    %34 = vector.load %arg4[%c0_9, %c0_10] : memref<5x128xf32, #tpu.memory_space<vmem>>, vector<5x128xf32>
    %35 = arith.addf %34, %33 : vector<5x128xf32>
    %c0_11 = arith.constant 0 : index
    %c0_12 = arith.constant 0 : index
    %36 = vector.load %arg4[%c0_11, %c0_12] : memref<5x128xf32, #tpu.memory_space<vmem>>, vector<5x128xf32>
    tpu.vector_store %arg4[%c0_11, %c0_12], %35 {strides = array<i32>} : memref<5x128xf32, #tpu.memory_space<vmem>>, vector<5x128xf32>,
    %c1_i32_13 = arith.constant 1 : i32
    %37 = arith.cmpi eq, %arg1, %c1_i32_13 : i32
    %38 = arith.extui %37 : i1 to i32
    %c0_i32_14 = arith.constant 0 : i32
    %39 = arith.cmpi ne, %38, %c0_i32_14 : i32
    scf.if %39 {
      %c0_15 = arith.constant 0 : index
      %c0_16 = arith.constant 0 : index
      %40 = vector.load %arg4[%c0_15, %c0_16] : memref<5x128xf32, #tpu.memory_space<vmem>>, vector<5x128xf32>
      %41 = vector.extract_strided_slice %40 {offsets = [4, 0], sizes = [1, 128], strides = [1, 1]} : vector<5x128xf32> to vector<1x128xf32>
      %cst_17 = arith.constant 1.000000e+00 : f32
      %42 = vector.broadcast %cst_17 : f32 to vector<1x128xf32>
      %43 = arith.maximumf %41, %42 : vector<1x128xf32>
      %44 = vector.broadcast %43 : vector<1x128xf32> to vector<5x128xf32>
      %45 = arith.divf %40, %44 : vector<5x128xf32>
      %c0_18 = arith.constant 0 : index
      %c0_19 = arith.constant 0 : index
      %46 = vector.load %arg4[%c0_18, %c0_19] : memref<5x128xf32, #tpu.memory_space<vmem>>, vector<5x128xf32>
      tpu.vector_store %arg4[%c0_18, %c0_19], %45 {strides = array<i32>} : memref<5x128xf32, #tpu.memory_space<vmem>>, vector<5x128xf32>,
    } else {
    }
    return
  }
  func.func @transform_0(%arg0: i32, %arg1: i32) -> (i32, i32) {
    %c0_i32 = arith.constant 0 : i32
    %c0_i32_0 = arith.constant 0 : i32
    return %arg1, %c0_i32 : i32, i32
  }
  func.func @transform_1(%arg0: i32, %arg1: i32) -> (i32, i32) {
    %c0_i32 = arith.constant 0 : i32
    %c0_i32_0 = arith.constant 0 : i32
    return %c0_i32, %arg1 : i32, i32
  }
  func.func @transform_2(%arg0: i32, %arg1: i32) -> (i32, i32) {
    %c0_i32 = arith.constant 0 : i32
    %c0_i32_0 = arith.constant 0 : i32
    return %c0_i32, %arg0 : i32, i32
  }
}

</mosaic_0001>

<bundles_post_ra>
// kernel: tpu_custom_call.1
= control target key start
LH: loop header
LB: loop body
LE: loop exit
PB: predicated region body
PF: predicated region fallthrough
CT: control target
= control target key end

     0   :  { %7 = vsyncpa [#allocation3], 0  ;;  %s1435_s0 = inlined_call_operand.vmem [shape: s32[512,1], index: 0, kind: input, shape index: {}]   ;;  %s1436_s1 = inlined_call_operand.vmem [shape: f32[5,512], index: 1, kind: input, shape index: {}]   ;;  %s1437_s2 = inlined_call_operand.hbm [shape: f32[5,512], index: 2, kind: output, shape index: {}]  }
   0x1   :  { %9 = vsyncpa [#allocation3 + $0x1], 0  ;;  %s1148_s9 = smov 0   ;;  %s1150_s10 = smov 0  }
   0x2   :  { %s1152_s11 = smov 0   ;;  %s1154_s12 = smov 0  }
   0x3   :  { %s1156_s13 = smov 0   ;;  %s1158_s14 = smov 0  }
   0x4   :  { %s1160_s15 = smov 0   ;;  %s1162_s16 = smov 0  }
   0x5 LB: > { %s699_s17 = sadd.s32 4294967295, %s1124_s16   ;;  %s700_s18 = sadd.s32 4294967294, %s1124_s16   ;;  %s1124_s16 = sphi %s1162_s16, %s15_s16   ;;  %s1120_s15 = sphi %s1160_s15, %s1446_s15   ;;  %s1116_s14 = sphi %s1158_s14, %s1445_s14   ;;  %s1112_s13 = sphi %s1156_s13, %s1444_s13   ;;  %s1108_s12 = sphi %s1154_s12, %s1443_s12   ;;  %s1104_s11 = sphi %s1152_s11, %s1442_s11   ;;  %s1100_s10 = sphi %s1150_s10, %s1441_s10   ;;  %s1096_s9 = sphi %s1148_s9, %s1440_s9  }
   0x6   : > { %s24_s19 = sadd.s32 1, %s1116_s14  ;;  %s27_s20 = sadd.s32 1, %s1120_s15 }
   0x7   : > { %p25_p0 = scmp.ge.s32.totalorder %s24_s19, 2  ;;  %p96_p1 = scmp.ne.s32.totalorder %s1104_s11, %s1100_s10 }
   0x8   : > { %p97_p2 = scmp.eq.s32.totalorder %s699_s17, 7  ;;  %p102_p4 = scmp.ne.s32.totalorder %s1100_s10, %s1096_s9 }
   0x9   : > { %s1448_s19 = smov (%p25_p0, %s24_s19), 0  ;;  %s1450_s20 = smov (!%p25_p0, %s27_s20), %s1120_s15 }
   0xa   : > { %p1197_p3 = por %p97_p2, %p96_p1  ;;  %p29_p5 = scmp.ge.s32.totalorder %s1450_s20, 4 }
   0xb   : > { %p103_p6 = scmp.eq.s32.totalorder %s700_s18, 7  ;;  %p703_p7 = scmp.ge.s32.totalorder %s1124_s16, 1 }
   0xc   : > { %p139_p8 = scmp.lt.s32.totalorder %s1124_s16, 9  ;;  %s1452_s20 = smov (%p29_p5, %s1450_s20), 0 }
   0xd   : > { %p1207_p9 = por %p103_p6, %p102_p4  ;;  %s83_s23 = ssub.s32 %s1120_s15, %s1452_s20 }
   0xe   : > { %p140_p10 = pnand %p703_p7, %p139_p8  ;;  %s86_s24 = sadd.s32 1, %s1104_s11 }
   0xf   : > { %p84_p11 = scmp.eq.s32.totalorder %s83_s23, 0  ;;  %s163_s26 = sand.u32 (!%p140_p10), 1, %s1100_s10  }
  0x10   : > { %143 = sbr.rel (%p140_p10) target bundleno = 496 (0x1f0), region = 28  ;;  %s705_s27 = sshll.u32 (!%p140_p10), %s1108_s12, 5 }
  0x11   : > { %s1215_s25 = scalar_select %p84_p11, %s1104_s11, %s86_s24  }
  0x12   : > { %s704_s28 = sshll.u32 (!%p140_p10), %s163_s26, 3  ;;  %p167_p12 = scmp.lt.s32.totalorder (!%p140_p10), %s705_s27, 63 }
  0x13   : > { %s707_s29 = sshll.u32 (!%p140_p10), %s1108_s12, 1  ;;  %s1232_s18 = scalar_lea.vmem (!%p140_p10), [#allocation2], %s704_s28 }
  0x14   : > { %p173_p13 = scmp.lt.s32.totalorder (!%p140_p10), %s707_s29, 3  ;;  %p709_p0 = scmp.ne.s32.totalorder (!%p140_p10), %s1108_s12, 0 }
  0x17   : > { %s1454_s27 = smov (!%p167_p12, %s705_s27), 63  ;;  %s1456_s29 = smov (!%p173_p13, %s707_s29), 3 }
  0x18   : > { %s706_s30 = sshll.u32 %s1454_s27, 3  ;;  %s708_s6 = sshll.u32 %s1456_s29, 3  ;;  %v1126_v0 = vmov (!%p709_p0), 0.0  }
  0x19   : > { %s1225_s5 = scalar_lea.vmem %s1435_s0, %s706_s30  ;;  %s1230_s17 = scalar_lea.vmem %s1436_s1, %s708_s6  ;;  %182 = vst [vmem:[%s1232_s18] sm:$0x1f] (!%p709_p0), %v1126_v0 }
  0x1a   : > { %181 = sbr.rel (%p709_p0) target bundleno = 33 (0x21), region = 32 }
  0x21 PF: > { %s710_s23 = sshll.u32 %s1112_s13, 7  ;;  %v727_v1 = vld [vmem:[%s1225_s5 + $0x80] sm:$0xff]  ;;  %v1127_v3 = vmov 0   ;;  %v728_v5 = vld [vmem:[%s1225_s5 + $0x88] sm:$0xff]  ;;  %v189_v11 = vld [vmem:[%s1225_s5 + $0x18] sm:$0xff]  ;;  %v1128_v17 = vmov 0.0|0.0  }
  0x22   : > { %v186_v2 = vld [vmem:[%s1225_s5] sm:$0xff]  ;;  %1027 = vset.pattern.permute.xlu1 %v1127_v3  ;;  %1026 = vset.pattern.permute.xlu0 %v1127_v3  ;;  %v1241_v4 = vstv %s710_s23  ;;  %v187_v6 = vld [vmem:[%s1225_s5 + $0x8] sm:$0xff]  ;;  %v188_v12 = vld [vmem:[%s1225_s5 + $0x10] sm:$0xff]  ;;  %vm1129_vm0 = vmmov 0   ;;  %p792_p1 = scmp.ne.s32.totalorder %s1108_s12, 1 }
  0x23   : > { %v333_v7 = vsub.s32 %v727_v1, %v1241_v4  ;;  %v203_v8 = vsub.s32 %v186_v2, %v1241_v4  ;;  %v334_v9 = vsub.s32 %v728_v5, %v1241_v4  ;;  %v204_v10 = vsub.s32 %v187_v6, %v1241_v4  ;;  %v730_v15 = vld [vmem:[%s1225_s5 + $0x98] sm:$0xff]  ;;  %v729_v16 = vld [vmem:[%s1225_s5 + $0x90] sm:$0xff]  ;;  %901 = vmatprep.subr.bf16.mxu0 %v1128_v17  ;;  %v191_v20 = vld [vmem:[%s1225_s5 + $0x28] sm:$0xff] }
  0x24   : > { %v206_v13 = vsub.s32 %v189_v11, %v1241_v4  ;;  %v205_v14 = vsub.s32 %v188_v12, %v1241_v4  ;;  %925 = vmatprep.subr.bf16.mxu1 %v1128_v17  ;;  %v336_v18 = vsub.s32 %v730_v15, %v1241_v4  ;;  %v335_v19 = vsub.s32 %v729_v16, %v1241_v4  ;;  %v190_v21 = vld [vmem:[%s1225_s5 + $0x20] sm:$0xff]  ;;  %v732_v24 = vld [vmem:[%s1225_s5 + $0xa8] sm:$0xff]  ;;  %v193_v28 = vld [vmem:[%s1225_s5 + $0x38] sm:$0xff] }
  0x25   : > { %350 = vperm.xlu1 %1027, %v333_v7   ;;  %220 = vperm.xlu0 %1026, %v203_v8   ;;  %v208_v22 = vsub.s32 %v191_v20, %v1241_v4  ;;  %v207_v23 = vsub.s32 %v190_v21, %v1241_v4  ;;  %v731_v25 = vld [vmem:[%s1225_s5 + $0xa0] sm:$0xff]  ;;  %v338_v26 = vsub.s32 %v732_v24, %v1241_v4  ;;  %v192_v29 = vld [vmem:[%s1225_s5 + $0x30] sm:$0xff]  ;;  %v734_v32 = vld [vmem:[%s1225_s5 + $0xb8] sm:$0xff]  ;;  %v1130_v5 = vmov 0.0  }
  0x26   : > { %v337_v27 = vsub.s32 %v731_v25, %v1241_v4  ;;  %v210_v30 = vsub.s32 %v193_v28, %v1241_v4  ;;  %v209_v31 = vsub.s32 %v192_v29, %v1241_v4  ;;  %v733_v33 = vld [vmem:[%s1225_s5 + $0xb0] sm:$0xff]  ;;  %v340_v34 = vsub.s32 %v734_v32, %v1241_v4  ;;  %v195_v36 = vld [vmem:[%s1225_s5 + $0x48] sm:$0xff]  ;;  %v194_v37 = vld [vmem:[%s1225_s5 + $0x40] sm:$0xff]  ;;  %898 = vmatprep.mubr.msk.f32.mxu1 %vm1129_vm0, %v1130_v5 }
  0x27   : > { %v339_v35 = vsub.s32 %v733_v33, %v1241_v4  ;;  %v212_v38 = vsub.s32 %v195_v36, %v1241_v4  ;;  %v211_v39 = vsub.s32 %v194_v37, %v1241_v4  ;;  %v736_v40 = vld [vmem:[%s1225_s5 + $0xc8] sm:$0xff]  ;;  %v735_v41 = vld [vmem:[%s1225_s5 + $0xc0] sm:$0xff]  ;;  %v197_v44 = vld [vmem:[%s1225_s5 + $0x58] sm:$0xff]  ;;  %863 = vmatprep.mubr.msk.f32.mxu0 %vm1129_vm0, %v1130_v5  ;;  %v183_v6 = vlaneseq }
  0x28   : > { %v342_v42 = vsub.s32 %v736_v40, %v1241_v4  ;;  %v341_v43 = vsub.s32 %v735_v41, %v1241_v4  ;;  %v196_v45 = vld [vmem:[%s1225_s5 + $0x50] sm:$0xff]  ;;  %v214_v46 = vsub.s32 %v197_v44, %v1241_v4  ;;  %v738_v48 = vld [vmem:[%s1225_s5 + $0xd8] sm:$0xff]  ;;  %v199_v52 = vld [vmem:[%s1225_s5 + $0x68] sm:$0xff] }
  0x29   : > { %353 = vperm.xlu1 %1027, %v334_v9   ;;  %223 = vperm.xlu0 %1026, %v204_v10   ;;  %v213_v47 = vsub.s32 %v196_v45, %v1241_v4  ;;  %v737_v49 = vld [vmem:[%s1225_s5 + $0xd0] sm:$0xff]  ;;  %v344_v50 = vsub.s32 %v738_v48, %v1241_v4  ;;  %v198_v53 = vld [vmem:[%s1225_s5 + $0x60] sm:$0xff]  ;;  %v216_v54 = vsub.s32 %v199_v52, %v1241_v4  ;;  %v740_v56 = vld [vmem:[%s1225_s5 + $0xe8] sm:$0xff]  ;;  %v1308_v9 = vand.u32 127, %v183_v6 }
  0x2a   : > { %v343_v51 = vsub.s32 %v737_v49, %v1241_v4  ;;  %v215_v55 = vsub.s32 %v198_v53, %v1241_v4  ;;  %v739_v57 = vld [vmem:[%s1225_s5 + $0xe0] sm:$0xff]  ;;  %v346_v58 = vsub.s32 %v740_v56, %v1241_v4  ;;  %v201_v60 = vld [vmem:[%s1225_s5 + $0x78] sm:$0xff]  ;;  %v200_v61 = vld [vmem:[%s1225_s5 + $0x70] sm:$0xff] }
  0x2b   : > { %v345_v59 = vsub.s32 %v739_v57, %v1241_v4  ;;  %v218_v62 = vsub.s32 %v201_v60, %v1241_v4  ;;  %v217_v63 = vsub.s32 %v200_v61, %v1241_v4  ;;  %v742_v0 = vld [vmem:[%s1225_s5 + $0xf8] sm:$0xff]  ;;  %v741_v1 = vld [vmem:[%s1225_s5 + $0xf0] sm:$0xff]  ;;  %v587_v45 = vld [vmem:[%s1232_s18] sm:$0x1f] }
  0x2c   : > { %v348_v2 = vsub.s32 %v742_v0, %v1241_v4  ;;  %v347_v3 = vsub.s32 %v741_v1, %v1241_v4  ;;  %v1131_v4 = vmov 1.0|1.0  }
  0x2d   : > { %229 = vperm.xlu1 %1027, %v206_v13   ;;  %226 = vperm.xlu0 %1026, %v205_v14  }
  0x31   : > { %359 = vperm.xlu1 %1027, %v336_v18   ;;  %356 = vperm.xlu0 %1026, %v335_v19  }
  0x35   : > { %235 = vperm.xlu1 %1027, %v208_v22   ;;  %232 = vperm.xlu0 %1026, %v207_v23  }
  0x39   : > { %365 = vperm.xlu1 %1027, %v338_v26   ;;  %362 = vperm.xlu0 %1026, %v337_v27  }
  0x3d   : > { %241 = vperm.xlu1 %1027, %v210_v30   ;;  %238 = vperm.xlu0 %1026, %v209_v31  }
  0x41   : > { %371 = vperm.xlu1 %1027, %v340_v34   ;;  %368 = vperm.xlu0 %1026, %v339_v35  }
  0x45   : > { %247 = vperm.xlu1 %1027, %v212_v38   ;;  %244 = vperm.xlu0 %1026, %v211_v39   ;;  %v315_v39 = vld [vmem:[%s1230_s17] sm:$0x1f] }
  0x49   : > { %377 = vperm.xlu1 %1027, %v342_v42   ;;  %374 = vperm.xlu0 %1026, %v341_v43  }
  0x4d   : > { %253 = vperm.xlu1 %1027, %v214_v46   ;;  %250 = vperm.xlu0 %1026, %v213_v47  }
  0x51   : > { %383 = vperm.xlu1 %1027, %v344_v50   ;;  %380 = vperm.xlu0 %1026, %v343_v51   ;;  %v597_v50 = vshrl.u32 (!%p792_p1), %v183_v6, 7 }
  0x53   : > { %v598_v52 = vsub.s32 (!%p792_p1), 4, %v597_v50 }
  0x55   : > { %259 = vperm.xlu1 %1027, %v216_v54   ;;  %256 = vperm.xlu0 %1026, %v215_v55  }
  0x59   : > { %389 = vperm.xlu1 %1027, %v346_v58   ;;  %386 = vperm.xlu0 %1026, %v345_v59  }
  0x5d   : > { %265 = vperm.xlu1 %1027, %v218_v62   ;;  %262 = vperm.xlu0 %1026, %v217_v63  }
  0x61   : > { %395 = vperm.xlu1 %1027, %v348_v2   ;;  %392 = vperm.xlu0 %1026, %v347_v3  }
  0xa4   : > { %v351_v7 = vpop.permute.xlu1 %350  ;;  %v221_v8 = vpop.permute.xlu0 %220 }
  0xa5   : > { %vm397_vm1 = vcmp.eq.s32.totalorder %v1308_v9, %v351_v7  ;;  %vm267_vm4 = vcmp.eq.s32.totalorder %v1308_v9, %v221_v8 }
  0xa8   : > { %v354_v10 = vpop.permute.xlu1 %353  ;;  %v224_v11 = vpop.permute.xlu0 %223 }
  0xa9   : > { %vm398_vm2 = vcmp.eq.s32.totalorder %v1308_v9, %v354_v10  ;;  %vm268_vm3 = vcmp.eq.s32.totalorder %v1308_v9, %v224_v11 }
  0xaa   : > { %vm902_vm5 = vmpackc.low %vm398_vm2, %vm397_vm1 }
  0xab   : > { %vm926_vm6 = vmpackc.low %vm268_vm3, %vm267_vm4  ;;  %903 = vmatpush3.bf16.msk.msra.mxu0 %vm902_vm5, %v1131_v4 }
  0xac   : > { %927 = vmatpush3.bf16.msk.msra.mxu1 %vm926_vm6, %v1131_v4  ;;  %v230_v12 = vpop.permute.xlu1 %229  ;;  %v227_v13 = vpop.permute.xlu0 %226  ;;  %904 = vmatprep.subr.bf16.mxu0 %v1128_v17 }
  0xad   : > { %vm270_vm7 = vcmp.eq.s32.totalorder %v1308_v9, %v230_v12  ;;  %vm269_vm8 = vcmp.eq.s32.totalorder %v1308_v9, %v227_v13  ;;  %928 = vmatprep.subr.bf16.mxu1 %v1128_v17 }
  0xae   : > { %vm929_vm9 = vmpackc.low %vm270_vm7, %vm269_vm8 }
  0xb0   : > { %930 = vmatpush3.bf16.msk.msra.mxu1 %vm929_vm9, %v1131_v4  ;;  %v360_v14 = vpop.permute.xlu1 %359  ;;  %v357_v15 = vpop.permute.xlu0 %356 }
  0xb1   : > { %vm400_vm10 = vcmp.eq.s32.totalorder %v1308_v9, %v360_v14  ;;  %vm399_vm11 = vcmp.eq.s32.totalorder %v1308_v9, %v357_v15  ;;  %931 = vmatprep.subr.bf16.mxu1 %v1128_v17 }
  0xb2   : > { %vm905_vm12 = vmpackc.low %vm400_vm10, %vm399_vm11 }
  0xb3   : > { %906 = vmatpush3.bf16.msk.msra.mxu0 %vm905_vm12, %v1131_v4 }
  0xb4   : > { %v236_v16 = vpop.permute.xlu1 %235  ;;  %v233_v18 = vpop.permute.xlu0 %232  ;;  %907 = vmatprep.subr.bf16.mxu0 %v1128_v17 }
  0xb5   : > { %vm272_vm13 = vcmp.eq.s32.totalorder %v1308_v9, %v236_v16  ;;  %vm271_vm14 = vcmp.eq.s32.totalorder %v1308_v9, %v233_v18 }
  0xb6   : > { %vm932_vm15 = vmpackc.low %vm272_vm13, %vm271_vm14 }
  0xb7   : > { %933 = vmatpush3.bf16.msk.msra.mxu1 %vm932_vm15, %v1131_v4 }
  0xb8   : > { %v366_v19 = vpop.permute.xlu1 %365  ;;  %v363_v20 = vpop.permute.xlu0 %362  ;;  %934 = vmatprep.subr.bf16.mxu1 %v1128_v17 }
  0xb9   : > { %vm402_vm0 = vcmp.eq.s32.totalorder %v1308_v9, %v366_v19  ;;  %vm401_vm1 = vcmp.eq.s32.totalorder %v1308_v9, %v363_v20 }
  0xba   : > { %vm908_vm2 = vmpackc.low %vm402_vm0, %vm401_vm1 }
  0xbb   : > { %909 = vmatpush3.bf16.msk.msra.mxu0 %vm908_vm2, %v1131_v4 }
  0xbc   : > { %v242_v21 = vpop.permute.xlu1 %241  ;;  %v239_v22 = vpop.permute.xlu0 %238  ;;  %910 = vmatprep.subr.bf16.mxu0 %v1128_v17 }
  0xbd   : > { %vm274_vm3 = vcmp.eq.s32.totalorder %v1308_v9, %v242_v21  ;;  %vm273_vm4 = vcmp.eq.s32.totalorder %v1308_v9, %v239_v22 }
  0xbe   : > { %vm935_vm5 = vmpackc.low %vm274_vm3, %vm273_vm4 }
  0xbf   : > { %936 = vmatpush3.bf16.msk.msra.mxu1 %vm935_vm5, %v1131_v4 }
  0xc0   : > { %v372_v23 = vpop.permute.xlu1 %371  ;;  %v369_v24 = vpop.permute.xlu0 %368  ;;  %937 = vmatprep.subr.bf16.mxu1 %v1128_v17 }
  0xc1   : > { %vm404_vm6 = vcmp.eq.s32.totalorder %v1308_v9, %v372_v23  ;;  %vm403_vm7 = vcmp.eq.s32.totalorder %v1308_v9, %v369_v24 }
  0xc2   : > { %vm911_vm8 = vmpackc.low %vm404_vm6, %vm403_vm7 }
  0xc3   : > { %912 = vmatpush3.bf16.msk.msra.mxu0 %vm911_vm8, %v1131_v4 }
  0xc4   : > { %v248_v25 = vpop.permute.xlu1 %247  ;;  %v245_v26 = vpop.permute.xlu0 %244  ;;  %913 = vmatprep.subr.bf16.mxu0 %v1128_v17 }
  0xc5   : > { %vm276_vm9 = vcmp.eq.s32.totalorder %v1308_v9, %v248_v25  ;;  %vm275_vm10 = vcmp.eq.s32.totalorder %v1308_v9, %v245_v26 }
  0xc6   : > { %vm938_vm11 = vmpackc.low %vm276_vm9, %vm275_vm10 }
  0xc7   : > { %939 = vmatpush3.bf16.msk.msra.mxu1 %vm938_vm11, %v1131_v4 }
  0xc8   : > { %v378_v27 = vpop.permute.xlu1 %377  ;;  %v375_v28 = vpop.permute.xlu0 %374  ;;  %940 = vmatprep.subr.bf16.mxu1 %v1128_v17 }
  0xc9   : > { %vm406_vm12 = vcmp.eq.s32.totalorder %v1308_v9, %v378_v27  ;;  %vm405_vm13 = vcmp.eq.s32.totalorder %v1308_v9, %v375_v28 }
  0xca   : > { %vm914_vm14 = vmpackc.low %vm406_vm12, %vm405_vm13 }
  0xcb   : > { %915 = vmatpush3.bf16.msk.msra.mxu0 %vm914_vm14, %v1131_v4 }
  0xcc   : > { %v254_v29 = vpop.permute.xlu1 %253  ;;  %v251_v30 = vpop.permute.xlu0 %250  ;;  %916 = vmatprep.subr.bf16.mxu0 %v1128_v17 }
  0xcd   : > { %vm278_vm15 = vcmp.eq.s32.totalorder %v1308_v9, %v254_v29  ;;  %vm277_vm0 = vcmp.eq.s32.totalorder %v1308_v9, %v251_v30 }
  0xce   : > { %vm941_vm1 = vmpackc.low %vm278_vm15, %vm277_vm0 }
  0xcf   : > { %942 = vmatpush3.bf16.msk.msra.mxu1 %vm941_vm1, %v1131_v4 }
  0xd0   : > { %v384_v31 = vpop.permute.xlu1 %383  ;;  %v381_v32 = vpop.permute.xlu0 %380  ;;  %943 = vmatprep.subr.bf16.mxu1 %v1128_v17 }
  0xd1   : > { %vm408_vm2 = vcmp.eq.s32.totalorder %v1308_v9, %v384_v31  ;;  %vm407_vm3 = vcmp.eq.s32.totalorder %v1308_v9, %v381_v32 }
  0xd2   : > { %vm917_vm4 = vmpackc.low %vm408_vm2, %vm407_vm3 }
  0xd3   : > { %918 = vmatpush3.bf16.msk.msra.mxu0 %vm917_vm4, %v1131_v4 }
  0xd4   : > { %v260_v33 = vpop.permute.xlu1 %259  ;;  %v257_v34 = vpop.permute.xlu0 %256  ;;  %919 = vmatprep.subr.bf16.mxu0 %v1128_v17 }
  0xd5   : > { %vm280_vm5 = vcmp.eq.s32.totalorder %v1308_v9, %v260_v33  ;;  %vm279_vm6 = vcmp.eq.s32.totalorder %v1308_v9, %v257_v34 }
  0xd6   : > { %vm944_vm7 = vmpackc.low %vm280_vm5, %vm279_vm6 }
  0xd7   : > { %945 = vmatpush3.bf16.msk.msra.mxu1 %vm944_vm7, %v1131_v4 }
  0xd8   : > { %v390_v35 = vpop.permute.xlu1 %389  ;;  %v387_v36 = vpop.permute.xlu0 %386  ;;  %946 = vmatprep.subr.bf16.mxu1 %v1128_v17 }
  0xd9   : > { %vm410_vm8 = vcmp.eq.s32.totalorder %v1308_v9, %v390_v35  ;;  %vm409_vm9 = vcmp.eq.s32.totalorder %v1308_v9, %v387_v36 }
  0xda   : > { %vm920_vm10 = vmpackc.low %vm410_vm8, %vm409_vm9 }
  0xdb   : > { %921 = vmatpush3.bf16.msk.msra.mxu0 %vm920_vm10, %v1131_v4 }
  0xdc   : > { %v266_v37 = vpop.permute.xlu1 %265  ;;  %v263_v38 = vpop.permute.xlu0 %262  ;;  %922 = vmatprep.subr.bf16.mxu0 %v1128_v17  ;;  %v759_v17 = vld [vmem:[%s1230_s17 + $0x8] sm:$0x1f] }
  0xdd   : > { %vm282_vm11 = vcmp.eq.s32.totalorder %v1308_v9, %v266_v37  ;;  %vm281_vm12 = vcmp.eq.s32.totalorder %v1308_v9, %v263_v38 }
  0xde   : > { %vm947_vm13 = vmpackc.low %vm282_vm11, %vm281_vm12 }
  0xdf   : > { %948 = vmatpush3.bf16.msk.msra.mxu1 %vm947_vm13, %v1131_v4 }
  0xe0   : > { %v396_v40 = vpop.permute.xlu1 %395  ;;  %v393_v41 = vpop.permute.xlu0 %392 }
  0xe1   : > { %vm412_vm14 = vcmp.eq.s32.totalorder %v1308_v9, %v396_v40  ;;  %vm411_vm15 = vcmp.eq.s32.totalorder %v1308_v9, %v393_v41 }
  0xe2   : > { %vm923_vm0 = vmpackc.low %vm412_vm14, %vm411_vm15  ;;  %899 = vmatmul.mubr.f32.vlgmr.msra.gmra.mrb[0].mxu1 %v315_v39 }
  0xe3   : > { %924 = vmatpush3.bf16.msk.msra.mxu0 %vm923_vm0, %v1131_v4 }
  0xe6   : > { %864 = vmatmul.mubr.f32.vlgmr.msra.gmra.mrb[0].mxu0 %v759_v17 }
 0x1b5   : > { %v583_v42 = vpop.f32.mrb[0].mxu1 }
 0x1b6   : > { %v900_v43 = vpop.f32.mrb[1].mxu1 }
 0x1b8   : > { %593 = sbr.rel (%p792_p1) target bundleno = 472 (0x1d8), region = 36 }
 0x1b9   : > { %v513_v44 = vpop.f32.mrb[0].mxu0 }
 0x1ba   : > { %v584_v46 = vadd.f32 %v583_v42, %v513_v44  ;;  %v865_v47 = vpop.f32.mrb[1].mxu0 }
 0x1bc   : > { %v588_v48 = vadd.f32 %v587_v45, %v584_v46 }
 0x1be   : > { %589 = vst [vmem:[%s1232_s18] sm:$0x1f] %v588_v48 }
 0x1c5   : > { %v594_v49 = vld [vmem:[%s1232_s18] sm:$0x1f] }
 0x1c6   : > { %v595_v51 = vmax.f32 %v594_v49, 1.0 }
 0x1c8   : > { %v599_v53 = vrot.slane %v595_v51, %v598_v52 }
 0x1ca   : > { %1028 = vrcp.f32 %v599_v53 }
 0x1d4   : > { %v1029_v54 = vpop.eup %1028 }
 0x1d5   : > { %v601_v55 = vmul.f32 %v1029_v54, %v594_v49 }
 0x1d7   : > { %602 = vst [vmem:[%s1232_s18] sm:$0x1f] %v601_v55 }
 0x1d8 PF: > { %s1385_s12 = scalar_lea.hbm %s1437_s2, %s710_s23  ;;  %s617_s28 = sshll.u32 %s1232_s18, 4  ;;  %s618_s28 = int_to_ptr.vmem [resolvable:$true] %s617_s28 }
 0x1d9   : > { %s604_s29 = scalar_lea.sflag [#allocation3], %s163_s26  ;;  %s1030_s30 = scalar_lea.vmem %s618_s28, 128 }
 0x1da   : > { %p1031_p2 = scmp.ne.s32.totalorder %s618_s28, %s1030_s30  ;;  %s1132_s3 = smov [#allocation2]  }
 0x1db   : > { %s1034_s4 = sshll.u32 %s1132_s3, 4  ;;  %s1035_s4 = int_to_ptr.vmem [resolvable:$false] %s1034_s4 }
 0x1dc   : > { %p1032_p4 = pnand %p1031_p2, %p1197_p3  ;;  %s1036_s13 = scalar_lea.vmem %s1035_s4, 256 }
 0x1dd   : > { %p1037_p6 = scmp.lt.s32.totalorder %s618_s28, %s1035_s4  ;;  %p1038_p7 = scmp.lt.s32.totalorder %s1036_s13, %s1030_s30 }
 0x1de   : > { %p1033_p5 = pneg %p1032_p4 }
 0x1df   : > { %p1039_p8 = por %p1038_p7, %p1037_p6 }
 0x1e1   : > { %p1040_p10 = pnand %p1039_p8, %p1033_p5 }
 0x1e3   : > { %1043 = shalt.err (!%p1040_p10)
}
 0x1e4   : > { %s1044_s26 = scalar_lea.hbm %s1385_s12, 128  ;;  %s1048_s7 = scalar_lea.hbm %s1437_s2, 512 }
 0x1e5   : > { %p1045_p11 = scmp.ne.s32.totalorder %s1385_s12, %s1044_s26  ;;  %p1049_p0 = scmp.lt.u32.totalorder %s1385_s12, %s1437_s2 }
 0x1e6   : > { %p1050_p1 = scmp.lt.u32.totalorder %s1048_s7, %s1044_s26  ;;  %p1052_p4 = scmp.lt.u32.totalorder %s1044_s26, %s1385_s12 }
 0x1e7   : > { %p1046_p12 = pnand %p1045_p11, %p1197_p3 }
 0x1e8   : > { %p1051_p2 = por %p1050_p1, %p1049_p0 }
 0x1e9   : > { %p1047_p13 = pneg %p1046_p12 }
 0x1ea   : > { %p1053_p5 = por %p1052_p4, %p1051_p2 }
 0x1ec   : > { %p1054_p6 = pnand %p1053_p5, %p1047_p13 }
 0x1ee   : > { %1057 = shalt.err (!%p1054_p6)
}
 0x1ef   : > { %949 = dma.vmem_to_hbm [thread:$0]  (%p1197_p3), %s618_s28, 128, %s1385_s12, %s604_s29  }
 0x1f0 PF: > { %p955_p7 = scmp.ge.s32.totalorder %s1124_s16, 2  ;;  %s629_s18 = sand.u32 1, %s1096_s9  }
 0x1f1   : > { %s630_s23 = scalar_lea.sflag [#allocation3], %s629_s18 }
 0x1f2   : > { %p952_p8 = pnand %p955_p7, %p1207_p9 }
 0x1f4   : > { %1091 = dma.done.wait (!%p952_p8), %s630_s23, 128  }
 0x1f5   : > { %1093 = vsyncadd (!%p952_p8), %s630_s23, 4294967168  ;;  %s15_s16 = sadd.s32 1, %s1124_s16   ;;  %s1440_s9 = smov %s1100_s10 }
 0x1f6   : > { %p12_p10 = scmp.ge.s32.totalorder %s15_s16, 10   ;;  %s1441_s10 = smov %s1104_s11 }
 0x1f7   : > { %s1442_s11 = smov %s1215_s25  ;;  %s1443_s12 = smov %s1116_s14 }
 0x1f8   : > { %s1444_s13 = smov %s1120_s15  ;;  %s1445_s14 = smov %s1448_s19 }
 0x1f9   : > { %s1446_s15 = smov %s1452_s20  ;;  %14 = sbr.rel (!%p12_p10) target bundleno = 5 (0x5), region = 76 }
 0x200   :  { %635 = vsyncpa [#allocation3], 1 }
 0x201   :  { %637 = vsyncpa [#allocation3 + $0x1], 1 }

</bundles_post_ra>
